<compile_context>
chip_gen: v5e
topology: v5e:2x2
jax: 0.10.0
libtpu: 0.0.40
codegen_flags: <defaults>
</compile_context>

<pallas_src>
import jax
import jax.numpy as jnp
from jax.experimental import pallas as pl
from jax.experimental.pallas import tpu as pltpu


def fused_kernel(x_ref, gate_ref, w1_ref, gamma_ref, beta_ref, w2_ref, o_ref):
    # Hardsigmoid on the (1, C_in) gate:  relu6(x + 3) / 6
    gate = jnp.clip(gate_ref[...] + 3.0, 0.0, 6.0) * (1.0 / 6.0)          # (1, C_in)

    # Fold the per-channel gate into the conv2d15 weight (40x96 VPU mul instead of 96x196).
    w1s = w1_ref[...] * gate                                              # (C_mid, C_in)

    # conv2d15: 1x1 conv, no bias  ->  (C_mid, C_in) @ (C_in, M)
    z = jnp.dot(w1s, x_ref[...], preferred_element_type=jnp.float32)      # (C_mid, M)

    # BatchNorm2d (training-mode: batch stats over N*H*W per channel, biased var, eps=1e-3).
    # Single pass: sum(z) and sum(z*z) over the lane axis (XLU), then rsqrt on the EUP.
    m = z.shape[1]
    inv_m = 1.0 / m
    s1 = jnp.sum(z, axis=1, keepdims=True)                                # (C_mid, 1)
    s2 = jnp.sum(z * z, axis=1, keepdims=True)                            # (C_mid, 1)
    mean = s1 * inv_m
    var = s2 * inv_m - mean * mean
    scale = jax.lax.rsqrt(var + 0.001) * gamma_ref[...]                   # (C_mid, 1)
    shift = beta_ref[...] - mean * scale                                  # (C_mid, 1)
    zn = z * scale + shift                                                # (C_mid, M)

    # conv2d16: 1x1 conv, no bias  ->  (C_out, C_mid) @ (C_mid, M)
    o_ref[...] = jnp.dot(w2_ref[...], zn, preferred_element_type=jnp.float32)


def fused_forward(x41, x37, w1, gamma, beta, w2):
    """x41: (1, C_in, 1, 1) NCHW gate; x37: (1, C_in, H, W) NCHW activations.
    w1: (C_mid, C_in) conv2d15 weight (1x1 squeezed); w2: (C_out, C_mid).
    Returns NCHW (1, C_out, H, W)."""
    N, C_in, H, W = x37.shape
    assert N == 1, "module spec has batch size 1 (zero-copy NCHW reshape relies on it)"
    C_mid = w1.shape[0]
    C_out = w2.shape[0]
    M = N * H * W

    # Zero-copy layout plumbing: no transposes anywhere.
    x = x37.reshape(C_in, M).astype(jnp.float32)                 # (C_in, M)
    gate = x41.reshape(1, C_in).astype(jnp.float32)              # (1, C_in)
    gamma_c = gamma.reshape(C_mid, 1).astype(jnp.float32)        # (C_mid, 1)
    beta_c = beta.reshape(C_mid, 1).astype(jnp.float32)          # (C_mid, 1)
    w1f = w1.astype(jnp.float32)                                 # (C_mid, C_in) as-is
    w2f = w2.astype(jnp.float32)                                 # (C_out, C_mid) as-is

    flops = 2 * (C_mid * C_in * M + C_out * C_mid * M) + 6 * C_mid * M
    bytes_accessed = 4 * (C_in * M + C_in + C_mid * C_in + 2 * C_mid
                          + C_out * C_mid + C_out * M)
    cost = pl.CostEstimate(flops=flops, transcendentals=C_mid,
                           bytes_accessed=bytes_accessed)

    out = pl.pallas_call(
        fused_kernel,
        out_shape=jax.ShapeDtypeStruct((C_out, M), jnp.float32),
        grid=(1,),
        in_specs=[
            pl.BlockSpec((C_in, M), lambda i: (0, 0)),
            pl.BlockSpec((1, C_in), lambda i: (0, 0)),
            pl.BlockSpec((C_mid, C_in), lambda i: (0, 0)),
            pl.BlockSpec((C_mid, 1), lambda i: (0, 0)),
            pl.BlockSpec((C_mid, 1), lambda i: (0, 0)),
            pl.BlockSpec((C_out, C_mid), lambda i: (0, 0)),
        ],
        out_specs=pl.BlockSpec((C_out, M), lambda i: (0, 0)),
        compiler_params=pltpu.CompilerParams(dimension_semantics=("arbitrary",)),
        cost_estimate=cost,
    )(x, gate, w1f, gamma_c, beta_c, w2f)

    # Zero-copy back to NCHW.
    return out.reshape(N, C_out, H, W)


def reference_forward(x41, x37, w1, gamma, beta, w2):
    """Pure-JAX reference mirroring the PyTorch module (NCHW)."""
    gate = jnp.clip(x41 + 3.0, 0.0, 6.0) / 6.0                            # hardsigmoid
    x = gate * x37                                                        # broadcast mul
    z = jnp.einsum('nchw,oc->nohw', x, w1)                                # 1x1 conv
    mean = jnp.mean(z, axis=(0, 2, 3), keepdims=True)
    var = jnp.mean((z - mean) ** 2, axis=(0, 2, 3), keepdims=True)        # biased var
    zn = (z - mean) * jax.lax.rsqrt(var + 0.001)
    zn = zn * gamma.reshape(1, -1, 1, 1) + beta.reshape(1, -1, 1, 1)
    return jnp.einsum('nchw,oc->nohw', zn, w2)                            # 1x1 conv


if __name__ == "__main__":
    key = jax.random.PRNGKey(0)
    k0, k1, k2, k3, k4, k5 = jax.random.split(key, 6)

    N, C_IN, H, W = 1, 96, 14, 14
    C_MID, C_OUT = 40, 240

    # Deterministic synthetic inputs (shapes from the module's forward).
    x37 = jax.random.normal(k0, (N, C_IN, H, W), dtype=jnp.float32)
    x41 = jax.random.normal(k1, (N, C_IN, 1, 1), dtype=jnp.float32)

    # Deterministic synthetic parameters (1x1 conv weights squeezed, BN affine).
    w1 = 0.1 * jax.random.normal(k2, (C_MID, C_IN), dtype=jnp.float32)    # conv2d15
    w2 = 0.1 * jax.random.normal(k3, (C_OUT, C_MID), dtype=jnp.float32)   # conv2d16
    gamma = 1.0 + 0.05 * jax.random.normal(k4, (C_MID,), dtype=jnp.float32)
    beta = 0.05 * jax.random.normal(k5, (C_MID,), dtype=jnp.float32)

    out = fused_forward(x41, x37, w1, gamma, beta, w2)
    out = jax.block_until_ready(out)

    ref = reference_forward(x41, x37, w1, gamma, beta, w2)
    assert out.shape == (N, C_OUT, H, W), out.shape
    assert jnp.allclose(out, ref, atol=1e-3, rtol=1e-3), "mismatch vs reference"

    print("KERNEL_OK")
</pallas_src>

<mosaic_0001>
module attributes {stable_mosaic.version = 11 : i64} {
  func.func @fused_kernel(%arg0: i32, %arg1: memref<96x196xf32, #tpu.memory_space<vmem>>, %arg2: memref<1x96xf32, #tpu.memory_space<vmem>>, %arg3: memref<40x96xf32, #tpu.memory_space<vmem>>, %arg4: memref<40x1xf32, #tpu.memory_space<vmem>>, %arg5: memref<40x1xf32, #tpu.memory_space<vmem>>, %arg6: memref<240x40xf32, #tpu.memory_space<vmem>>, %arg7: memref<240x196xf32, #tpu.memory_space<vmem>>) attributes {dimension_semantics = [#tpu.dimension_semantics<arbitrary>], iteration_bounds = array<i64: 1>, scalar_prefetch = 0 : i64, scratch_operands = 0 : i64, tpu.core_type = #tpu.core_type<tc>, window_params = [{pipeline_mode = #tpu.pipeline_mode<synchronous>, transform_indices = @transform_0, window_bounds = array<i64: 96, 196>}, {pipeline_mode = #tpu.pipeline_mode<synchronous>, transform_indices = @transform_1, window_bounds = array<i64: 1, 96>}, {pipeline_mode = #tpu.pipeline_mode<synchronous>, transform_indices = @transform_2, window_bounds = array<i64: 40, 96>}, {pipeline_mode = #tpu.pipeline_mode<synchronous>, transform_indices = @transform_3, window_bounds = array<i64: 40, 1>}, {pipeline_mode = #tpu.pipeline_mode<synchronous>, transform_indices = @transform_4, window_bounds = array<i64: 40, 1>}, {pipeline_mode = #tpu.pipeline_mode<synchronous>, transform_indices = @transform_5, window_bounds = array<i64: 240, 40>}, {pipeline_mode = #tpu.pipeline_mode<synchronous>, transform_indices = @transform_6, window_bounds = array<i64: 240, 196>}]} {
    %c0 = arith.constant 0 : index
    %c0_0 = arith.constant 0 : index
    %0 = vector.load %arg2[%c0, %c0_0] : memref<1x96xf32, #tpu.memory_space<vmem>>, vector<1x96xf32>
    %cst = arith.constant 3.000000e+00 : f32
    %1 = vector.broadcast %cst : f32 to vector<1x96xf32>
    %2 = arith.addf %0, %1 : vector<1x96xf32>
    %cst_1 = arith.constant 0.000000e+00 : f32
    %cst_2 = arith.constant 6.000000e+00 : f32
    %3 = vector.broadcast %cst_1 : f32 to vector<1x96xf32>
    %4 = arith.maximumf %3, %2 : vector<1x96xf32>
    %5 = vector.broadcast %cst_2 : f32 to vector<1x96xf32>
    %6 = arith.minimumf %5, %4 : vector<1x96xf32>
    %cst_3 = arith.constant 0.166666672 : f32
    %7 = vector.broadcast %cst_3 : f32 to vector<1x96xf32>
    %8 = arith.mulf %6, %7 : vector<1x96xf32>
    %c0_4 = arith.constant 0 : index
    %c0_5 = arith.constant 0 : index
    %9 = vector.load %arg3[%c0_4, %c0_5] : memref<40x96xf32, #tpu.memory_space<vmem>>, vector<40x96xf32>
    %10 = vector.broadcast %8 : vector<1x96xf32> to vector<40x96xf32>
    %11 = arith.mulf %9, %10 : vector<40x96xf32>
    %c0_6 = arith.constant 0 : index
    %c0_7 = arith.constant 0 : index
    %12 = vector.load %arg1[%c0_6, %c0_7] : memref<96x196xf32, #tpu.memory_space<vmem>>, vector<96x196xf32>
    %cst_8 = arith.constant dense<0.000000e+00> : vector<40x196xf32>
    %13 = tpu.matmul %11, %12, %cst_8 {dimension_numbers = #tpu.dot_dimension_numbers<[1], [0], [0], [1], [0, 0, 1, 1], [], []>} : vector<40x96xf32>, vector<96x196xf32>, vector<40x196xf32> -> vector<40x196xf32>
    %cst_9 = arith.constant dense<0.000000e+00> : vector<40xf32>
    %14 = vector.multi_reduction <add>, %13, %cst_9 [1] : vector<40x196xf32> to vector<40xf32>
    %15 = vector.shape_cast %14 : vector<40xf32> to vector<40x1xf32>
    %16 = arith.mulf %13, %13 : vector<40x196xf32>
    %cst_10 = arith.constant dense<0.000000e+00> : vector<40xf32>
    %17 = vector.multi_reduction <add>, %16, %cst_10 [1] : vector<40x196xf32> to vector<40xf32>
    %18 = vector.shape_cast %17 : vector<40xf32> to vector<40x1xf32>
    %cst_11 = arith.constant 0.00510204071 : f32
    %19 = vector.broadcast %cst_11 : f32 to vector<40x1xf32>
    %20 = arith.mulf %15, %19 : vector<40x1xf32>
    %cst_12 = arith.constant 0.00510204071 : f32
    %21 = vector.broadcast %cst_12 : f32 to vector<40x1xf32>
    %22 = arith.mulf %18, %21 : vector<40x1xf32>
    %23 = arith.mulf %20, %20 : vector<40x1xf32>
    %24 = arith.subf %22, %23 : vector<40x1xf32>
    %cst_13 = arith.constant 1.000000e-03 : f32
    %25 = vector.broadcast %cst_13 : f32 to vector<40x1xf32>
    %26 = arith.addf %24, %25 : vector<40x1xf32>
    %27 = math.rsqrt %26 : vector<40x1xf32>
    %c0_14 = arith.constant 0 : index
    %c0_15 = arith.constant 0 : index
    %28 = vector.load %arg4[%c0_14, %c0_15] : memref<40x1xf32, #tpu.memory_space<vmem>>, vector<40x1xf32>
    %29 = arith.mulf %27, %28 : vector<40x1xf32>
    %c0_16 = arith.constant 0 : index
    %c0_17 = arith.constant 0 : index
    %30 = vector.load %arg5[%c0_16, %c0_17] : memref<40x1xf32, #tpu.memory_space<vmem>>, vector<40x1xf32>
    %31 = arith.mulf %20, %29 : vector<40x1xf32>
    %32 = arith.subf %30, %31 : vector<40x1xf32>
    %33 = vector.broadcast %29 : vector<40x1xf32> to vector<40x196xf32>
    %34 = arith.mulf %13, %33 : vector<40x196xf32>
    %35 = vector.broadcast %32 : vector<40x1xf32> to vector<40x196xf32>
    %36 = arith.addf %34, %35 : vector<40x196xf32>
    %c0_18 = arith.constant 0 : index
    %c0_19 = arith.constant 0 : index
    %37 = vector.load %arg6[%c0_18, %c0_19] : memref<240x40xf32, #tpu.memory_space<vmem>>, vector<240x40xf32>
    %cst_20 = arith.constant dense<0.000000e+00> : vector<240x196xf32>
    %38 = tpu.matmul %37, %36, %cst_20 {dimension_numbers = #tpu.dot_dimension_numbers<[1], [0], [0], [1], [0, 0, 1, 1], [], []>} : vector<240x40xf32>, vector<40x196xf32>, vector<240x196xf32> -> vector<240x196xf32>
    %c0_21 = arith.constant 0 : index
    %c0_22 = arith.constant 0 : index
    %39 = vector.load %arg7[%c0_21, %c0_22] : memref<240x196xf32, #tpu.memory_space<vmem>>, vector<240x196xf32>
    tpu.vector_store %arg7[%c0_21, %c0_22], %38 {strides = array<i32>} : memref<240x196xf32, #tpu.memory_space<vmem>>, vector<240x196xf32>,
    return
  }
  func.func @transform_0(%arg0: i32) -> (i32, i32) {
    %c0_i32 = arith.constant 0 : i32
    %c0_i32_0 = arith.constant 0 : i32
    %c0_i32_1 = arith.constant 0 : i32
    return %c0_i32, %c0_i32_0 : i32, i32
  }
  func.func @transform_1(%arg0: i32) -> (i32, i32) {
    %c0_i32 = arith.constant 0 : i32
    %c0_i32_0 = arith.constant 0 : i32
    %c0_i32_1 = arith.constant 0 : i32
    return %c0_i32, %c0_i32_0 : i32, i32
  }
  func.func @transform_2(%arg0: i32) -> (i32, i32) {
    %c0_i32 = arith.constant 0 : i32
    %c0_i32_0 = arith.constant 0 : i32
    %c0_i32_1 = arith.constant 0 : i32
    return %c0_i32, %c0_i32_0 : i32, i32
  }
  func.func @transform_3(%arg0: i32) -> (i32, i32) {
    %c0_i32 = arith.constant 0 : i32
    %c0_i32_0 = arith.constant 0 : i32
    %c0_i32_1 = arith.constant 0 : i32
    return %c0_i32, %c0_i32_0 : i32, i32
  }
  func.func @transform_4(%arg0: i32) -> (i32, i32) {
    %c0_i32 = arith.constant 0 : i32
    %c0_i32_0 = arith.constant 0 : i32
    %c0_i32_1 = arith.constant 0 : i32
    return %c0_i32, %c0_i32_0 : i32, i32
  }
  func.func @transform_5(%arg0: i32) -> (i32, i32) {
    %c0_i32 = arith.constant 0 : i32
    %c0_i32_0 = arith.constant 0 : i32
    %c0_i32_1 = arith.constant 0 : i32
    return %c0_i32, %c0_i32_0 : i32, i32
  }
  func.func @transform_6(%arg0: i32) -> (i32, i32) {
    %c0_i32 = arith.constant 0 : i32
    %c0_i32_0 = arith.constant 0 : i32
    %c0_i32_1 = arith.constant 0 : i32
    return %c0_i32, %c0_i32_0 : i32, i32
  }
}

</mosaic_0001>

<bundles_post_ra>
// kernel: tpu_custom_call.1
= control target key start
LH: loop header
LB: loop body
LE: loop exit
PB: predicated region body
PF: predicated region fallthrough
CT: control target
= control target key end

     0   :  { %vm65_vm0 = vcmask 785408   ;;  %vm145_vm1 = vcmask 556032   ;;  %s1492_s0 = inlined_call_operand.vmem [shape: f32[96,196], index: 0, kind: input, shape index: {}]   ;;  %s1493_s1 = inlined_call_operand.vmem [shape: f32[1,96], index: 1, kind: input, shape index: {}]   ;;  %s1494_s2 = inlined_call_operand.vmem [shape: f32[40,96], index: 2, kind: input, shape index: {}]   ;;  %s1495_s3 = inlined_call_operand.vmem [shape: f32[40,1], index: 3, kind: input, shape index: {}]   ;;  %s1496_s4 = inlined_call_operand.vmem [shape: f32[40,1], index: 4, kind: input, shape index: {}]   ;;  %s1497_s5 = inlined_call_operand.vmem [shape: f32[240,40], index: 5, kind: input, shape index: {}]   ;;  %s1498_s6 = inlined_call_operand.vmem [shape: f32[240,196], index: 6, kind: output, shape index: {}]  }
   0x1   :  { %v64_v0 = vld [vmem:[%s1492_s0 + $0xb8] sm:$0xff]  ;;  %v63_v1 = vld [vmem:[%s1492_s0 + $0xb0] sm:$0xff]  ;;  %v62_v2 = vld [vmem:[%s1492_s0 + $0xa8] sm:$0xff] }
   0x2   :  { %117 = vmatpush.msra.mxu1 %v64_v0  ;;  %85 = vmatpush.msra.mxu0 %v63_v1  ;;  %v61_v3 = vld [vmem:[%s1492_s0 + $0xa0] sm:$0xff]  ;;  %v60_v4 = vld [vmem:[%s1492_s0 + $0x98] sm:$0xff]  ;;  %v59_v5 = vld [vmem:[%s1492_s0 + $0x90] sm:$0xff] }
   0x3   :  { %v58_v6 = vld [vmem:[%s1492_s0 + $0x88] sm:$0xff]  ;;  %v57_v7 = vld [vmem:[%s1492_s0 + $0x80] sm:$0xff]  ;;  %v56_v8 = vld [vmem:[%s1492_s0 + $0x78] sm:$0xff] }
   0x4   :  { %118 = vmatpush.msra.mxu1 %v62_v2  ;;  %86 = vmatpush.msra.mxu0 %v61_v3  ;;  %v55_v9 = vld [vmem:[%s1492_s0 + $0x70] sm:$0xff]  ;;  %v54_v10 = vld [vmem:[%s1492_s0 + $0x68] sm:$0xff]  ;;  %v53_v11 = vld [vmem:[%s1492_s0 + $0x60] sm:$0xff] }
   0x5   :  { %v23_v12 = vld [vmem:[%s1493_s1] sm:$0x1]  ;;  %v52_v14 = vld [vmem:[%s1492_s0 + $0x58] sm:$0xff]  ;;  %v51_v15 = vld [vmem:[%s1492_s0 + $0x50] sm:$0xff] }
   0x6   :  { %119 = vmatpush.msra.mxu1 %v60_v4  ;;  %87 = vmatpush.msra.mxu0 %v59_v5  ;;  %v24_v13 = vadd.f32 3.0, %v23_v12  ;;  %v50_v17 = vld [vmem:[%s1492_s0 + $0x48] sm:$0xff]  ;;  %v49_v18 = vld [vmem:[%s1492_s0 + $0x40] sm:$0xff]  ;;  %v48_v20 = vld [vmem:[%s1492_s0 + $0x38] sm:$0xff] }
   0x7   :  { %v47_v21 = vld [vmem:[%s1492_s0 + $0x30] sm:$0xff]  ;;  %v46_v23 = vld [vmem:[%s1492_s0 + $0x28] sm:$0xff]  ;;  %v45_v24 = vld [vmem:[%s1492_s0 + $0x20] sm:$0xff] }
   0x8   :  { %120 = vmatpush.msra.mxu1 %v58_v6  ;;  %88 = vmatpush.msra.mxu0 %v57_v7  ;;  %v25_v16 = vmax.f32 %v24_v13, 0.0  ;;  %v28_v25 = vld [vmem:[%s1494_s2] sm:$0xff]  ;;  %v44_v27 = vld [vmem:[%s1492_s0 + $0x18] sm:$0xff]  ;;  %v43_v28 = vld [vmem:[%s1492_s0 + $0x10] sm:$0xff] }
   0x9   :  { %v42_v29 = vld [vmem:[%s1492_s0 + $0x8] sm:$0xff]  ;;  %v41_v30 = vld [vmem:[%s1492_s0] sm:$0xff]  ;;  %v30_v34 = vld [vmem:[%s1494_s2 + $0x10] sm:$0xff] }
   0xa   :  { %121 = vmatpush.msra.mxu1 %v56_v8  ;;  %89 = vmatpush.msra.mxu0 %v55_v9  ;;  %v26_v19 = vmin.f32 %v25_v16, 6.0  ;;  %v29_v32 = vld [vmem:[%s1494_s2 + $0x8] sm:$0xff]  ;;  %v31_v36 = vld [vmem:[%s1494_s2 + $0x18] sm:$0xff]  ;;  %v32_v38 = vld [vmem:[%s1494_s2 + $0x20] sm:$0xff] }
   0xc   :  { %122 = vmatpush.msra.mxu1 %v54_v10  ;;  %90 = vmatpush.msra.mxu0 %v53_v11  ;;  %v27_v22 = vmul.f32 0.16666667, %v26_v19 }
   0xe   :  { %123 = vmatpush.msra.mxu1 %v52_v14  ;;  %91 = vmatpush.msra.mxu0 %v51_v15  ;;  %v34_v26 = vperm.slane %v27_v22, 0 }
  0x10   :  { %124 = vmatpush.msra.mxu1 %v50_v17  ;;  %92 = vmatpush.msra.mxu0 %v49_v18  ;;  %v36_v31 = vmul.f32 %v34_v26, %v28_v25  ;;  %v37_v33 = vmul.f32 %v34_v26, %v29_v32  ;;  %v38_v35 = vmul.f32 %v34_v26, %v30_v34 }
  0x11   :  { %v39_v37 = vmul.f32 %v34_v26, %v31_v36  ;;  %v40_v39 = vmul.f32 %v34_v26, %v32_v38 }
  0x12   :  { %125 = vmatpush.msra.mxu1 %v48_v20  ;;  %93 = vmatpush.msra.mxu0 %v47_v21 }
  0x14   :  { %126 = vmatpush.msra.mxu1 %v46_v23  ;;  %94 = vmatpush.msra.mxu0 %v45_v24  ;;  %v859_v24 = vmov 0  }
  0x15   :  { %846 = vset.pattern.permute.xlu2 %v859_v24  ;;  %848 = vset.pattern.permute.xlu0 %v859_v24 }
  0x16   :  { %127 = vmatpush.msra.mxu1 %v44_v27  ;;  %95 = vmatpush.msra.mxu0 %v43_v28 }
  0x17   :  { %847 = vset.pattern.permute.xlu1 %v859_v24 }
  0x18   :  { %128 = vmatpush.msra.mxu1 %v42_v29  ;;  %96 = vmatpush.msra.mxu0 %v41_v30 }
  0x19   :  { %770 = vmatmul.msk.f32.vlgmr.msra.gmra.mxu1 %vm65_vm0, %v36_v31  ;;  %765 = vmatmul.msk.f32.vlgmr.msra.gmra.mxu0 %vm65_vm0, %v36_v31 }
  0x21   :  { %771 = vmatmul.msk.f32.gmra.mxu1 %vm65_vm0, %v37_v33  ;;  %766 = vmatmul.msk.f32.gmra.mxu0 %vm65_vm0, %v37_v33 }
  0x29   :  { %772 = vmatmul.msk.f32.gmra.mxu1 %vm65_vm0, %v38_v35  ;;  %767 = vmatmul.msk.f32.gmra.mxu0 %vm65_vm0, %v38_v35 }
  0x31   :  { %773 = vmatmul.msk.f32.gmra.mxu1 %vm65_vm0, %v39_v37  ;;  %768 = vmatmul.msk.f32.gmra.mxu0 %vm65_vm0, %v39_v37 }
  0x39   :  { %774 = vmatmul.msk.f32.gmra.mxu1 %vm65_vm0, %v40_v39  ;;  %769 = vmatmul.msk.f32.gmra.mxu0 %vm65_vm0, %v40_v39 }
  0x96   :  { %v995_v40 = vpop.f32.mrf.mxu1  ;;  %v997_v41 = vpop.f32.mrf.mxu0 }
  0x97   :  { %v146_v9 = vsel %vm145_vm1, %v995_v40, 0.0  ;;  %v167_v11 = vmul.f32 %v995_v40, %v995_v40  ;;  %v166_v13 = vmul.f32 %v997_v41, %v997_v41 }
  0x98   :  { %v147_v12 = vadd.f32 %v146_v9, %v997_v41 }
  0x99   :  { %v176_v14 = vsel %vm145_vm1, %v167_v11, 0.0 }
  0x9a   :  { %v177_v15 = vadd.f32 %v176_v14, %v166_v13 }
  0x9e   :  { %v999_v42 = vpop.f32.mrf.mxu1  ;;  %v1001_v43 = vpop.f32.mrf.mxu0 }
  0x9f   :  { %v150_v44 = vsel %vm145_vm1, %v999_v42, 0.0  ;;  %v169_v58 = vmul.f32 %v999_v42, %v999_v42  ;;  %v168_v61 = vmul.f32 %v1001_v43, %v1001_v43 }
  0xa0   :  { %v151_v45 = vadd.f32 %v150_v44, %v1001_v43 }
  0xa1   :  { %v180_v0 = vsel %vm145_vm1, %v169_v58, 0.0 }
  0xa2   :  { %152 = vadd.xlane.f32.xlu2 %v151_v45  ;;  %v181_v5 = vadd.f32 %v180_v0, %v168_v61 }
  0xa6   :  { %v1006_v46 = vpop.f32.mrf.mxu1  ;;  %v1008_v47 = vpop.f32.mrf.mxu0 }
  0xa7   :  { %v154_v48 = vsel %vm145_vm1, %v1006_v46, 0.0  ;;  %v171_v3 = vmul.f32 %v1006_v46, %v1006_v46  ;;  %v170_v7 = vmul.f32 %v1008_v47, %v1008_v47 }
  0xa8   :  { %v155_v49 = vadd.f32 %v154_v48, %v1008_v47 }
  0xa9   :  { %v184_v8 = vsel %vm145_vm1, %v171_v3, 0.0 }
  0xaa   :  { %156 = vadd.xlane.f32.xlu1 %v155_v49  ;;  %v185_v10 = vadd.f32 %v184_v8, %v170_v7 }
  0xae   :  { %v1013_v50 = vpop.f32.mrf.mxu1  ;;  %v1015_v51 = vpop.f32.mrf.mxu0 }
  0xaf   :  { %v173_v52 = vmul.f32 %v1013_v50, %v1013_v50  ;;  %v158_v53 = vsel %vm145_vm1, %v1013_v50, 0.0  ;;  %v172_v54 = vmul.f32 %v1015_v51, %v1015_v51 }
  0xb0   :  { %v159_v55 = vadd.f32 %v158_v53, %v1015_v51 }
  0xb1   :  { %v188_v56 = vsel %vm145_vm1, %v173_v52, 0.0 }
  0xb2   :  { %160 = vadd.xlane.f32.xlu0 %v159_v55  ;;  %v189_v57 = vadd.f32 %v188_v56, %v172_v54 }
  0xb4   :  { %190 = vadd.xlane.f32.xlu2 %v189_v57 }
  0xb6   :  { %v1027_v59 = vpop.f32.mrf.mxu1  ;;  %v1029_v60 = vpop.f32.mrf.mxu0 }
  0xb7   :  { %v175_v62 = vmul.f32 %v1027_v59, %v1027_v59  ;;  %v162_v63 = vsel %vm145_vm1, %v1027_v59, 0.0  ;;  %v174_v1 = vmul.f32 %v1029_v60, %v1029_v60 }
  0xb8   :  { %v163_v2 = vadd.f32 %v162_v63, %v1029_v60 }
  0xb9   :  { %v192_v4 = vsel %vm145_vm1, %v175_v62, 0.0 }
  0xba   :  { %164 = vadd.xlane.f32.xlu0 %v163_v2  ;;  %v193_v6 = vadd.f32 %v192_v4, %v174_v1 }
  0xbc   :  { %182 = vadd.xlane.f32.xlu2 %v181_v5  ;;  %194 = vadd.xlane.f32.xlu1 %v193_v6 }
  0xc2   :  { %186 = vadd.xlane.f32.xlu0 %v185_v10 }
  0xc4   :  { %148 = vadd.xlane.f32.xlu1 %v147_v12 }
  0xca   :  { %178 = vadd.xlane.f32.xlu0 %v177_v15 }
 0x115   :  { %v153_v16 = vpop.xlane.xlu2 %152 }
 0x116   :  { %v1059_v25 = vmul.f32 0.0051020407, %v153_v16  ;;  %v272_v16 = vld [vmem:[%s1495_s3 + $0x8] sm:$0xff] }
 0x118   :  { %v207_v31 = vmul.f32 %v1059_v25, %v1059_v25 }
 0x11d   :  { %v157_v19 = vpop.xlane.xlu1 %156 }
 0x11e   :  { %v1069_v35 = vmul.f32 0.0051020407, %v157_v19  ;;  %v275_v19 = vld [vmem:[%s1495_s3 + $0x20] sm:$0xff] }
 0x120   :  { %v208_v45 = vmul.f32 %v1069_v35, %v1069_v35 }
 0x125   :  { %v161_v17 = vpop.xlane.xlu0 %160 }
 0x126   :  { %v1055_v18 = vmul.f32 0.0051020407, %v161_v17 }
 0x127   :  { %v191_v20 = vpop.xlane.xlu2 %190 }
 0x128   :  { %v209_v21 = vmul.f32 %v1055_v18, %v1055_v18  ;;  %v204_v22 = vmul.f32 0.0051020407, %v191_v20 }
 0x12a   :  { %v214_v23 = vsub.f32 %v204_v22, %v209_v21 }
 0x12c   :  { %v1061_v27 = vadd.f32 0.001, %v214_v23 }
 0x12d   :  { %v165_v26 = vpop.xlane.xlu0 %164 }
 0x12e   :  { %v1063_v28 = vmul.f32 0.0051020407, %v165_v26  ;;  %849 = vrsqrt.f32 %v1061_v27  ;;  %vm257_vm12 = vweird.f32 %v1061_v27 }
 0x12f   :  { %v183_v29 = vpop.xlane.xlu2 %182  ;;  %v195_v30 = vpop.xlane.xlu1 %194 }
 0x130   :  { %v210_v32 = vmul.f32 %v1063_v28, %v1063_v28  ;;  %v202_v33 = vmul.f32 0.0051020407, %v183_v29  ;;  %v205_v34 = vmul.f32 0.0051020407, %v195_v30 }
 0x132   :  { %v212_v36 = vsub.f32 %v202_v33, %v207_v31  ;;  %v215_v37 = vsub.f32 %v205_v34, %v210_v32  ;;  %v285_v31 = vld [vmem:[%s1496_s4 + $0x20] sm:$0xff] }
 0x134   :  { %v217_v38 = vadd.f32 0.001, %v212_v36  ;;  %v220_v39 = vadd.f32 0.001, %v215_v37  ;;  %v1074_v52 = vpop.eup %849  ;;  %v273_v36 = vld [vmem:[%s1495_s3 + $0x10] sm:$0xff] }
 0x135   :  { %v187_v44 = vpop.xlane.xlu0 %186  ;;  %v252_v56 = vmul.f32 %v1074_v52, %v1061_v27  ;;  %vm258_vm10 = vweird.f32 %v1074_v52 }
 0x136   :  { %851 = vrsqrt.f32 %v217_v38  ;;  %v203_v48 = vmul.f32 0.0051020407, %v187_v44  ;;  %vm237_vm4 = vweird.f32 %v217_v38  ;;  %vm267_vm5 = vweird.f32 %v220_v39  ;;  %vm259_vm13 = vmor %vm257_vm12, %vm258_vm10 }
 0x137   :  { %853 = vrsqrt.f32 %v220_v39  ;;  %v149_v49 = vpop.xlane.xlu1 %148  ;;  %v253_v2 = vmul.f32 %v1074_v52, %v252_v56 }
 0x138   :  { %v213_v53 = vsub.f32 %v203_v48, %v208_v45  ;;  %v1076_v55 = vmul.f32 0.0051020407, %v149_v49 }
 0x139   :  { %v254_v10 = vmul.f32 0.5, %v253_v2 }
 0x13a   :  { %v218_v54 = vadd.f32 0.001, %v213_v53  ;;  %v206_v0 = vmul.f32 %v1076_v55, %v1076_v55  ;;  %v274_v53 = vld [vmem:[%s1495_s3 + $0x18] sm:$0xff] }
 0x13b   :  { %v255_v20 = vsub.f32 1.5, %v254_v10 }
 0x13c   :  { %v852_v57 = vpop.eup %851  ;;  %855 = vrsqrt.f32 %v218_v54  ;;  %vm247_vm9 = vweird.f32 %v218_v54 }
 0x13d   :  { %v854_v58 = vpop.eup %853  ;;  %v232_v61 = vmul.f32 %v852_v57, %v217_v38  ;;  %v179_v62 = vpop.xlane.xlu0 %178  ;;  %vm238_vm2 = vweird.f32 %v852_v57  ;;  %v256_v37 = vmul.f32 %v1074_v52, %v255_v20 }
 0x13e   :  { %v262_v63 = vmul.f32 %v854_v58, %v220_v39  ;;  %v201_v1 = vmul.f32 0.0051020407, %v179_v62  ;;  %vm268_vm3 = vweird.f32 %v854_v58  ;;  %vm239_vm6 = vmor %vm237_vm4, %vm238_vm2  ;;  %vm396_vm2 = vcmask 326656  }
 0x13f   :  { %v233_v3 = vmul.f32 %v852_v57, %v232_v61  ;;  %vm269_vm7 = vmor %vm267_vm5, %vm268_vm3  ;;  %v260_v49 = vsel %vm259_vm13, %v1074_v52, %v256_v37  ;;  %v271_v61 = vld [vmem:[%s1495_s3] sm:$0xff]  ;;  %v383_v37 = vld [vmem:[%s1497_s5 + $0x88] sm:$0xff] }
 0x140   :  { %v263_v4 = vmul.f32 %v854_v58, %v262_v63  ;;  %v211_v5 = vsub.f32 %v201_v1, %v206_v0  ;;  %v281_v0 = vld [vmem:[%s1496_s4] sm:$0xff] }
 0x141   :  { %v234_v6 = vmul.f32 0.5, %v233_v3 }
 0x142   :  { %v856_v7 = vpop.eup %855  ;;  %v264_v8 = vmul.f32 0.5, %v263_v4  ;;  %v216_v9 = vadd.f32 0.001, %v211_v5  ;;  %v282_v4 = vld [vmem:[%s1496_s4 + $0x8] sm:$0xff] }
 0x143   :  { %v235_v11 = vsub.f32 1.5, %v234_v6  ;;  %v242_v12 = vmul.f32 %v856_v7, %v218_v54  ;;  %vm248_vm8 = vweird.f32 %v856_v7 }
 0x144   :  { %v265_v13 = vsub.f32 1.5, %v264_v8  ;;  %857 = vrsqrt.f32 %v216_v9  ;;  %vm249_vm11 = vmor %vm247_vm9, %vm248_vm8  ;;  %vm227_vm15 = vweird.f32 %v216_v9 }
 0x145   :  { %v243_v14 = vmul.f32 %v856_v7, %v242_v12  ;;  %v236_v15 = vmul.f32 %v852_v57, %v235_v11 }
 0x146   :  { %v266_v17 = vmul.f32 %v854_v58, %v265_v13 }
 0x147   :  { %v244_v21 = vmul.f32 0.5, %v243_v14  ;;  %v240_v22 = vsel %vm239_vm6, %v852_v57, %v236_v15  ;;  %v279_v57 = vmul.f32 %v274_v53, %v260_v49  ;;  %v371_v49 = vld [vmem:[%s1497_s5 + $0x28] sm:$0xff] }
 0x148   :  { %v277_v23 = vmul.f32 %v272_v16, %v240_v22  ;;  %v270_v24 = vsel %vm269_vm7, %v854_v58, %v266_v17  ;;  %v387_v53 = vld [vmem:[%s1497_s5 + $0xa8] sm:$0xff] }
 0x149   :  { %v245_v26 = vsub.f32 1.5, %v244_v21  ;;  %v280_v29 = vmul.f32 %v275_v19, %v270_v24  ;;  %v289_v62 = vmul.f32 %v279_v57, %v1055_v18 }
 0x14a   :  { %v858_v30 = vpop.eup %857  ;;  %303 = vperm.xlu2 %846, %v277_v23   ;;  %v287_v18 = vmul.f32 %v277_v23, %v1059_v25 }
 0x14b   :  { %v222_v32 = vmul.f32 %v858_v30, %v216_v9  ;;  %v290_v33 = vmul.f32 %v280_v29, %v1063_v28  ;;  %v246_v34 = vmul.f32 %v856_v7, %v245_v26  ;;  %v283_v28 = vld [vmem:[%s1496_s4 + $0x10] sm:$0xff]  ;;  %vm228_vm14 = vweird.f32 %v858_v30 }
 0x14c   :  { %vm229_vm0 = vmor %vm227_vm15, %vm228_vm14  ;;  %v292_v5 = vsub.f32 %v282_v4, %v287_v18 }
 0x14d   :  { %v223_v38 = vmul.f32 %v858_v30, %v222_v32  ;;  %v295_v39 = vsub.f32 %v285_v31, %v290_v33  ;;  %v250_v44 = vsel %vm249_vm11, %v856_v7, %v246_v34  ;;  %v380_v31 = vld [vmem:[%s1497_s5 + $0x70] sm:$0xff]  ;;  %v381_v32 = vld [vmem:[%s1497_s5 + $0x78] sm:$0xff]  ;;  %v366_v33 = vld [vmem:[%s1497_s5] sm:$0xff] }
 0x14e   :  { %v278_v45 = vmul.f32 %v273_v36, %v250_v44  ;;  %v382_v34 = vld [vmem:[%s1497_s5 + $0x80] sm:$0xff]  ;;  %v367_v36 = vld [vmem:[%s1497_s5 + $0x8] sm:$0xff]  ;;  %v369_v44 = vld [vmem:[%s1497_s5 + $0x18] sm:$0xff] }
 0x14f   :  { %v224_v48 = vmul.f32 0.5, %v223_v38  ;;  %353 = vperm.xlu0 %848, %v295_v39   ;;  %v368_v38 = vld [vmem:[%s1497_s5 + $0x10] sm:$0xff] }
 0x150   :  { %v288_v54 = vmul.f32 %v278_v45, %v1069_v35  ;;  %v284_v35 = vld [vmem:[%s1496_s4 + $0x18] sm:$0xff]  ;;  %v384_v39 = vld [vmem:[%s1497_s5 + $0x90] sm:$0xff] }
 0x151   :  { %v225_v27 = vsub.f32 1.5, %v224_v48  ;;  %v294_v2 = vsub.f32 %v284_v35, %v289_v62  ;;  %v370_v48 = vld [vmem:[%s1497_s5 + $0x20] sm:$0xff]  ;;  %v375_v62 = vld [vmem:[%s1497_s5 + $0x48] sm:$0xff]  ;;  %v376_v35 = vld [vmem:[%s1497_s5 + $0x50] sm:$0xff] }
 0x152   :  { %308 = vperm.xlu2 %846, %v278_v45   ;;  %v293_v56 = vsub.f32 %v283_v28, %v288_v54  ;;  %v385_v45 = vld [vmem:[%s1497_s5 + $0x98] sm:$0xff]  ;;  %v386_v28 = vld [vmem:[%s1497_s5 + $0xa0] sm:$0xff]  ;;  %v372_v54 = vld [vmem:[%s1497_s5 + $0x30] sm:$0xff] }
 0x153   :  { %v226_v58 = vmul.f32 %v858_v30, %v225_v27  ;;  %v388_v27 = vld [vmem:[%s1497_s5 + $0xb0] sm:$0xff] }
 0x154   :  { %343 = vperm.xlu1 %847, %v293_v56   ;;  %v373_v56 = vld [vmem:[%s1497_s5 + $0x38] sm:$0xff] }
 0x155   :  { %v230_v52 = vsel %vm229_vm0, %v858_v30, %v226_v58  ;;  %v377_v30 = vld [vmem:[%s1497_s5 + $0x58] sm:$0xff]  ;;  %v390_v58 = vld [vmem:[%s1497_s5 + $0xc0] sm:$0xff] }
 0x156   :  { %v276_v63 = vmul.f32 %v271_v61, %v230_v52  ;;  %v374_v61 = vld [vmem:[%s1497_s5 + $0x40] sm:$0xff]  ;;  %v391_v52 = vld [vmem:[%s1497_s5 + $0xc8] sm:$0xff] }
 0x158   :  { %v286_v1 = vmul.f32 %v276_v63, %v1076_v55 }
 0x15a   :  { %313 = vperm.xlu2 %846, %v279_v57   ;;  %v291_v3 = vsub.f32 %v281_v0, %v286_v1  ;;  %v389_v57 = vld [vmem:[%s1497_s5 + $0xb8] sm:$0xff] }
 0x15b   :  { %v393_v0 = vld [vmem:[%s1497_s5 + $0xd8] sm:$0xff] }
 0x15c   :  { %348 = vperm.xlu1 %847, %v294_v2   ;;  %333 = vperm.xlu0 %848, %v291_v3   ;;  %v394_v3 = vld [vmem:[%s1497_s5 + $0xe0] sm:$0xff] }
 0x162   :  { %298 = vperm.xlu2 %846, %v276_v63   ;;  %v392_v63 = vld [vmem:[%s1497_s5 + $0xd0] sm:$0xff] }
 0x164   :  { %318 = vperm.xlu1 %847, %v280_v29  }
 0x16c   :  { %338 = vperm.xlu1 %847, %v292_v5   ;;  %v395_v5 = vld [vmem:[%s1497_s5 + $0xe8] sm:$0xff] }
 0x1a4   :  { %v304_v6 = vpop.permute.xlu2 %303 }
 0x1ac   :  { %v309_v8 = vpop.permute.xlu2 %308 }
 0x1ad   :  { %v325_v17 = vmul.f32 %v309_v8, %v1008_v47  ;;  %v326_v20 = vmul.f32 %v309_v8, %v1006_v46 }
 0x1b4   :  { %v314_v55 = vpop.permute.xlu2 %313 }
 0x1b5   :  { %v327_v14 = vmul.f32 %v314_v55, %v1015_v51  ;;  %v328_v16 = vmul.f32 %v314_v55, %v1013_v50 }
 0x1bc   :  { %v299_v21 = vpop.permute.xlu2 %298 }
 0x1bd   :  { %v321_v24 = vmul.f32 %v299_v21, %v997_v41  ;;  %v322_v29 = vmul.f32 %v299_v21, %v995_v40  ;;  %v378_v40 = vld [vmem:[%s1497_s5 + $0x60] sm:$0xff]  ;;  %v379_v41 = vld [vmem:[%s1497_s5 + $0x68] sm:$0xff] }
 0x1c1   :  { %v354_v10 = vpop.permute.xlu0 %353 }
 0x1c6   :  { %v344_v7 = vpop.permute.xlu1 %343 }
 0x1c7   :  { %v360_v51 = vadd.f32 %v344_v7, %v325_v17  ;;  %v361_v50 = vadd.f32 %v344_v7, %v326_v20 }
 0x1ce   :  { %v349_v9 = vpop.permute.xlu1 %348  ;;  %v334_v23 = vpop.permute.xlu0 %333 }
 0x1cf   :  { %v362_v19 = vadd.f32 %v349_v9, %v327_v14  ;;  %v363_v22 = vadd.f32 %v349_v9, %v328_v16 }
 0x1d6   :  { %v319_v11 = vpop.permute.xlu1 %318 }
 0x1d7   :  { %v329_v12 = vmul.f32 %v319_v11, %v1029_v60  ;;  %v330_v13 = vmul.f32 %v319_v11, %v1027_v59  ;;  %v323_v60 = vmul.f32 %v304_v6, %v1001_v43  ;;  %v324_v59 = vmul.f32 %v304_v6, %v999_v42 }
 0x1d8   :  { %v356_v43 = vadd.f32 %v334_v23, %v321_v24  ;;  %v357_v42 = vadd.f32 %v334_v23, %v322_v29 }
 0x1d9   :  { %v364_v25 = vadd.f32 %v354_v10, %v329_v12  ;;  %v365_v15 = vadd.f32 %v354_v10, %v330_v13 }
 0x1db   :  { %498 = vmatpush.msrb.mxu0 %v364_v25  ;;  %835 = vmatpush.msra.mxu2 %v364_v25 }
 0x1dc   :  { %605 = vmatpush.msrb.mxu1 %v365_v15  ;;  %840 = vmatpush.msra.mxu3 %v365_v15 }
 0x1dd   :  { %499 = vmatpush.msrb.mxu0 %v362_v19  ;;  %836 = vmatpush.msra.mxu2 %v362_v19 }
 0x1de   :  { %606 = vmatpush.msrb.mxu1 %v363_v22  ;;  %841 = vmatpush.msra.mxu3 %v363_v22  ;;  %v339_v47 = vpop.permute.xlu1 %338 }
 0x1df   :  { %v358_v26 = vadd.f32 %v339_v47, %v323_v60  ;;  %v359_v46 = vadd.f32 %v339_v47, %v324_v59  ;;  %500 = vmatpush.msrb.mxu0 %v360_v51  ;;  %837 = vmatpush.msra.mxu2 %v360_v51 }
 0x1e0   :  { %607 = vmatpush.msrb.mxu1 %v361_v50  ;;  %842 = vmatpush.msra.mxu3 %v361_v50 }
 0x1e1   :  { %501 = vmatpush.msrb.mxu0 %v358_v26  ;;  %838 = vmatpush.msra.mxu2 %v358_v26 }
 0x1e2   :  { %608 = vmatpush.msrb.mxu1 %v359_v46  ;;  %843 = vmatpush.msra.mxu3 %v359_v46 }
 0x1e3   :  { %502 = vmatpush.msrb.mxu0 %v356_v43  ;;  %839 = vmatpush.msra.mxu2 %v356_v43 }
 0x1e4   :  { %609 = vmatpush.msrb.mxu1 %v357_v42  ;;  %844 = vmatpush.msra.mxu3 %v357_v42 }
 0x1e5   :  { %786 = vmatmul.msk.f32.vlgmr.msra.gmra.mxu2 %vm396_vm2, %v377_v30  ;;  %816 = vmatmul.msk.f32.vlgmr.msra.gmra.mxu3 %vm396_vm2, %v377_v30 }
 0x1e6   :  { %775 = vmatmul.msk.f32.vlgmr.msrb.gmra.mxu0 %vm396_vm2, %v366_v33  ;;  %805 = vmatmul.msk.f32.vlgmr.msrb.gmra.mxu1 %vm396_vm2, %v366_v33 }
 0x1ed   :  { %787 = vmatmul.msk.f32.gmra.mxu2 %vm396_vm2, %v378_v40  ;;  %817 = vmatmul.msk.f32.gmra.mxu3 %vm396_vm2, %v378_v40 }
 0x1ee   :  { %776 = vmatmul.msk.f32.gmra.mxu0 %vm396_vm2, %v367_v36  ;;  %806 = vmatmul.msk.f32.gmra.mxu1 %vm396_vm2, %v367_v36 }
 0x1f5   :  { %788 = vmatmul.msk.f32.gmra.mxu2 %vm396_vm2, %v379_v41  ;;  %818 = vmatmul.msk.f32.gmra.mxu3 %vm396_vm2, %v379_v41 }
 0x1f6   :  { %777 = vmatmul.msk.f32.gmra.mxu0 %vm396_vm2, %v368_v38  ;;  %807 = vmatmul.msk.f32.gmra.mxu1 %vm396_vm2, %v368_v38 }
 0x1fd   :  { %789 = vmatmul.msk.f32.gmra.mxu2 %vm396_vm2, %v380_v31  ;;  %819 = vmatmul.msk.f32.gmra.mxu3 %vm396_vm2, %v380_v31 }
 0x1fe   :  { %778 = vmatmul.msk.f32.gmra.mxu0 %vm396_vm2, %v369_v44  ;;  %808 = vmatmul.msk.f32.gmra.mxu1 %vm396_vm2, %v369_v44 }
 0x205   :  { %790 = vmatmul.msk.f32.gmra.mxu2 %vm396_vm2, %v381_v32  ;;  %820 = vmatmul.msk.f32.gmra.mxu3 %vm396_vm2, %v381_v32 }
 0x206   :  { %779 = vmatmul.msk.f32.gmra.mxu0 %vm396_vm2, %v370_v48  ;;  %809 = vmatmul.msk.f32.gmra.mxu1 %vm396_vm2, %v370_v48 }
 0x20d   :  { %791 = vmatmul.msk.f32.gmra.mxu2 %vm396_vm2, %v382_v34  ;;  %821 = vmatmul.msk.f32.gmra.mxu3 %vm396_vm2, %v382_v34 }
 0x20e   :  { %780 = vmatmul.msk.f32.gmra.mxu0 %vm396_vm2, %v371_v49  ;;  %810 = vmatmul.msk.f32.gmra.mxu1 %vm396_vm2, %v371_v49 }
 0x215   :  { %792 = vmatmul.msk.f32.gmra.mxu2 %vm396_vm2, %v383_v37  ;;  %822 = vmatmul.msk.f32.gmra.mxu3 %vm396_vm2, %v383_v37 }
 0x216   :  { %781 = vmatmul.msk.f32.gmra.mxu0 %vm396_vm2, %v372_v54  ;;  %811 = vmatmul.msk.f32.gmra.mxu1 %vm396_vm2, %v372_v54 }
 0x21d   :  { %793 = vmatmul.msk.f32.gmra.mxu2 %vm396_vm2, %v384_v39  ;;  %823 = vmatmul.msk.f32.gmra.mxu3 %vm396_vm2, %v384_v39 }
 0x21e   :  { %782 = vmatmul.msk.f32.gmra.mxu0 %vm396_vm2, %v373_v56  ;;  %812 = vmatmul.msk.f32.gmra.mxu1 %vm396_vm2, %v373_v56 }
 0x225   :  { %794 = vmatmul.msk.f32.gmra.mxu2 %vm396_vm2, %v385_v45  ;;  %824 = vmatmul.msk.f32.gmra.mxu3 %vm396_vm2, %v385_v45 }
 0x226   :  { %783 = vmatmul.msk.f32.gmra.mxu0 %vm396_vm2, %v374_v61  ;;  %813 = vmatmul.msk.f32.gmra.mxu1 %vm396_vm2, %v374_v61 }
 0x22d   :  { %795 = vmatmul.msk.f32.gmra.mxu2 %vm396_vm2, %v386_v28  ;;  %825 = vmatmul.msk.f32.gmra.mxu3 %vm396_vm2, %v386_v28 }
 0x22e   :  { %784 = vmatmul.msk.f32.gmra.mxu0 %vm396_vm2, %v375_v62  ;;  %814 = vmatmul.msk.f32.gmra.mxu1 %vm396_vm2, %v375_v62 }
 0x235   :  { %796 = vmatmul.msk.f32.gmra.mxu2 %vm396_vm2, %v387_v53  ;;  %826 = vmatmul.msk.f32.gmra.mxu3 %vm396_vm2, %v387_v53 }
 0x236   :  { %785 = vmatmul.msk.f32.gmra.mxu0 %vm396_vm2, %v376_v35  ;;  %815 = vmatmul.msk.f32.gmra.mxu1 %vm396_vm2, %v376_v35 }
 0x23d   :  { %797 = vmatmul.msk.f32.gmra.mxu2 %vm396_vm2, %v388_v27  ;;  %827 = vmatmul.msk.f32.gmra.mxu3 %vm396_vm2, %v388_v27 }
 0x245   :  { %798 = vmatmul.msk.f32.gmra.mxu2 %vm396_vm2, %v389_v57  ;;  %828 = vmatmul.msk.f32.gmra.mxu3 %vm396_vm2, %v389_v57 }
 0x24d   :  { %799 = vmatmul.msk.f32.gmra.mxu2 %vm396_vm2, %v390_v58  ;;  %829 = vmatmul.msk.f32.gmra.mxu3 %vm396_vm2, %v390_v58 }
 0x255   :  { %800 = vmatmul.msk.f32.gmra.mxu2 %vm396_vm2, %v391_v52  ;;  %830 = vmatmul.msk.f32.gmra.mxu3 %vm396_vm2, %v391_v52 }
 0x25d   :  { %801 = vmatmul.msk.f32.gmra.mxu2 %vm396_vm2, %v392_v63  ;;  %831 = vmatmul.msk.f32.gmra.mxu3 %vm396_vm2, %v392_v63 }
 0x263   :  { %v504_v55 = vpop.f32.mrf.mxu0  ;;  %v611_v12 = vpop.f32.mrf.mxu1 }
 0x264   :  { %701 = vst [vmem:[%s1498_s6] sm:$0xff] %v504_v55 }
 0x265   :  { %802 = vmatmul.msk.f32.gmra.mxu2 %vm396_vm2, %v393_v0  ;;  %832 = vmatmul.msk.f32.gmra.mxu3 %vm396_vm2, %v393_v0  ;;  %702 = vst.msk [vmem:[%s1498_s6 + $0x8] sm:$0xff] %vm145_vm1, %v611_v12 }
 0x268   :  { %v537_v1 = vpop.f32.mrf.mxu2  ;;  %v644_v2 = vpop.f32.mrf.mxu3 }
 0x269   :  { %723 = vst [vmem:[%s1498_s6 + $0xb0] sm:$0xff] %v537_v1 }
 0x26a   :  { %724 = vst.msk [vmem:[%s1498_s6 + $0xb8] sm:$0xff] %vm145_vm1, %v644_v2 }
 0x26b   :  { %v507_v13 = vpop.f32.mrf.mxu0  ;;  %v614_v15 = vpop.f32.mrf.mxu1 }
 0x26c   :  { %703 = vst [vmem:[%s1498_s6 + $0x10] sm:$0xff] %v507_v13 }
 0x26d   :  { %803 = vmatmul.msk.f32.gmra.mxu2 %vm396_vm2, %v394_v3  ;;  %833 = vmatmul.msk.f32.gmra.mxu3 %vm396_vm2, %v394_v3  ;;  %704 = vst.msk [vmem:[%s1498_s6 + $0x18] sm:$0xff] %vm145_vm1, %v614_v15 }
 0x270   :  { %v540_v18 = vpop.f32.mrf.mxu2  ;;  %v647_v4 = vpop.f32.mrf.mxu3 }
 0x271   :  { %725 = vst [vmem:[%s1498_s6 + $0xc0] sm:$0xff] %v540_v18 }
 0x272   :  { %726 = vst.msk [vmem:[%s1498_s6 + $0xc8] sm:$0xff] %vm145_vm1, %v647_v4 }
 0x273   :  { %v510_v16 = vpop.f32.mrf.mxu0  ;;  %v617_v20 = vpop.f32.mrf.mxu1 }
 0x274   :  { %705 = vst [vmem:[%s1498_s6 + $0x20] sm:$0xff] %v510_v16 }
 0x275   :  { %804 = vmatmul.msk.f32.gmra.mxu2 %vm396_vm2, %v395_v5  ;;  %834 = vmatmul.msk.f32.gmra.mxu3 %vm396_vm2, %v395_v5  ;;  %706 = vst.msk [vmem:[%s1498_s6 + $0x28] sm:$0xff] %vm145_vm1, %v617_v20 }
 0x278   :  { %v543_v6 = vpop.f32.mrf.mxu2  ;;  %v650_v7 = vpop.f32.mrf.mxu3 }
 0x279   :  { %727 = vst [vmem:[%s1498_s6 + $0xd0] sm:$0xff] %v543_v6 }
 0x27a   :  { %728 = vst.msk [vmem:[%s1498_s6 + $0xd8] sm:$0xff] %vm145_vm1, %v650_v7 }
 0x27b   :  { %v513_v21 = vpop.f32.mrf.mxu0  ;;  %v620_v59 = vpop.f32.mrf.mxu1 }
 0x27c   :  { %707 = vst [vmem:[%s1498_s6 + $0x30] sm:$0xff] %v513_v21 }
 0x27d   :  { %708 = vst.msk [vmem:[%s1498_s6 + $0x38] sm:$0xff] %vm145_vm1, %v620_v59 }
 0x280   :  { %v546_v8 = vpop.f32.mrf.mxu2  ;;  %v653_v9 = vpop.f32.mrf.mxu3 }
 0x281   :  { %729 = vst [vmem:[%s1498_s6 + $0xe0] sm:$0xff] %v546_v8 }
 0x282   :  { %730 = vst.msk [vmem:[%s1498_s6 + $0xe8] sm:$0xff] %vm145_vm1, %v653_v9 }
 0x283   :  { %v516_v51 = vpop.f32.mrf.mxu0  ;;  %v623_v50 = vpop.f32.mrf.mxu1 }
 0x284   :  { %709 = vst [vmem:[%s1498_s6 + $0x40] sm:$0xff] %v516_v51 }
 0x285   :  { %710 = vst.msk [vmem:[%s1498_s6 + $0x48] sm:$0xff] %vm145_vm1, %v623_v50 }
 0x288   :  { %v549_v10 = vpop.f32.mrf.mxu2  ;;  %v656_v11 = vpop.f32.mrf.mxu3 }
 0x289   :  { %731 = vst [vmem:[%s1498_s6 + $0xf0] sm:$0xff] %v549_v10 }
 0x28a   :  { %732 = vst.msk [vmem:[%s1498_s6 + $0xf8] sm:$0xff] %vm145_vm1, %v656_v11 }
 0x28b   :  { %v519_v24 = vpop.f32.mrf.mxu0  ;;  %v626_v29 = vpop.f32.mrf.mxu1 }
 0x28c   :  { %711 = vst [vmem:[%s1498_s6 + $0x50] sm:$0xff] %v519_v24 }
 0x28d   :  { %712 = vst.msk [vmem:[%s1498_s6 + $0x58] sm:$0xff] %vm145_vm1, %v626_v29 }
 0x290   :  { %v552_v14 = vpop.f32.mrf.mxu2  ;;  %v659_v25 = vpop.f32.mrf.mxu3 }
 0x291   :  { %733 = vst [vmem:[%s1498_s6 + $0x100] sm:$0xff] %v552_v14 }
 0x292   :  { %734 = vst.msk [vmem:[%s1498_s6 + $0x108] sm:$0xff] %vm145_vm1, %v659_v25 }
 0x293   :  { %v522_v43 = vpop.f32.mrf.mxu0  ;;  %v629_v40 = vpop.f32.mrf.mxu1 }
 0x294   :  { %713 = vst [vmem:[%s1498_s6 + $0x60] sm:$0xff] %v522_v43 }
 0x295   :  { %714 = vst.msk [vmem:[%s1498_s6 + $0x68] sm:$0xff] %vm145_vm1, %v629_v40 }
 0x298   :  { %v555_v17 = vpop.f32.mrf.mxu2  ;;  %v662_v19 = vpop.f32.mrf.mxu3 }
 0x299   :  { %735 = vst [vmem:[%s1498_s6 + $0x110] sm:$0xff] %v555_v17 }
 0x29a   :  { %736 = vst.msk [vmem:[%s1498_s6 + $0x118] sm:$0xff] %vm145_vm1, %v662_v19 }
 0x29b   :  { %v525_v41 = vpop.f32.mrf.mxu0  ;;  %v632_v33 = vpop.f32.mrf.mxu1 }
 0x29c   :  { %715 = vst [vmem:[%s1498_s6 + $0x70] sm:$0xff] %v525_v41 }
 0x29d   :  { %716 = vst.msk [vmem:[%s1498_s6 + $0x78] sm:$0xff] %vm145_vm1, %v632_v33 }
 0x2a0   :  { %v558_v22 = vpop.f32.mrf.mxu2  ;;  %v665_v60 = vpop.f32.mrf.mxu3 }
 0x2a1   :  { %737 = vst [vmem:[%s1498_s6 + $0x120] sm:$0xff] %v558_v22 }
 0x2a2   :  { %738 = vst.msk [vmem:[%s1498_s6 + $0x128] sm:$0xff] %vm145_vm1, %v665_v60 }
 0x2a3   :  { %v528_v37 = vpop.f32.mrf.mxu0  ;;  %v635_v38 = vpop.f32.mrf.mxu1 }
 0x2a4   :  { %717 = vst [vmem:[%s1498_s6 + $0x80] sm:$0xff] %v528_v37 }
 0x2a5   :  { %718 = vst.msk [vmem:[%s1498_s6 + $0x88] sm:$0xff] %vm145_vm1, %v635_v38 }
 0x2a8   :  { %v561_v23 = vpop.f32.mrf.mxu2  ;;  %v668_v47 = vpop.f32.mrf.mxu3 }
 0x2a9   :  { %739 = vst [vmem:[%s1498_s6 + $0x130] sm:$0xff] %v561_v23 }
 0x2aa   :  { %740 = vst.msk [vmem:[%s1498_s6 + $0x138] sm:$0xff] %vm145_vm1, %v668_v47 }
 0x2ab   :  { %v531_v45 = vpop.f32.mrf.mxu0  ;;  %v638_v48 = vpop.f32.mrf.mxu1 }
 0x2ac   :  { %719 = vst [vmem:[%s1498_s6 + $0x90] sm:$0xff] %v531_v45 }
 0x2ad   :  { %720 = vst.msk [vmem:[%s1498_s6 + $0x98] sm:$0xff] %vm145_vm1, %v638_v48 }
 0x2b0   :  { %v564_v26 = vpop.f32.mrf.mxu2  ;;  %v671_v46 = vpop.f32.mrf.mxu3 }
 0x2b1   :  { %741 = vst [vmem:[%s1498_s6 + $0x140] sm:$0xff] %v564_v26 }
 0x2b2   :  { %742 = vst.msk [vmem:[%s1498_s6 + $0x148] sm:$0xff] %vm145_vm1, %v671_v46 }
 0x2b3   :  { %v534_v53 = vpop.f32.mrf.mxu0  ;;  %v641_v54 = vpop.f32.mrf.mxu1 }
 0x2b4   :  { %721 = vst [vmem:[%s1498_s6 + $0xa0] sm:$0xff] %v534_v53 }
 0x2b5   :  { %722 = vst.msk [vmem:[%s1498_s6 + $0xa8] sm:$0xff] %vm145_vm1, %v641_v54 }
 0x2b8   :  { %v567_v42 = vpop.f32.mrf.mxu2  ;;  %v674_v30 = vpop.f32.mrf.mxu3 }
 0x2b9   :  { %743 = vst [vmem:[%s1498_s6 + $0x150] sm:$0xff] %v567_v42 }
 0x2ba   :  { %744 = vst.msk [vmem:[%s1498_s6 + $0x158] sm:$0xff] %vm145_vm1, %v674_v30 }
 0x2c0   :  { %v570_v31 = vpop.f32.mrf.mxu2  ;;  %v677_v32 = vpop.f32.mrf.mxu3 }
 0x2c1   :  { %745 = vst [vmem:[%s1498_s6 + $0x160] sm:$0xff] %v570_v31 }
 0x2c2   :  { %746 = vst.msk [vmem:[%s1498_s6 + $0x168] sm:$0xff] %vm145_vm1, %v677_v32 }
 0x2c8   :  { %v573_v34 = vpop.f32.mrf.mxu2  ;;  %v680_v36 = vpop.f32.mrf.mxu3 }
 0x2c9   :  { %747 = vst [vmem:[%s1498_s6 + $0x170] sm:$0xff] %v573_v34 }
 0x2ca   :  { %748 = vst.msk [vmem:[%s1498_s6 + $0x178] sm:$0xff] %vm145_vm1, %v680_v36 }
 0x2d0   :  { %v576_v39 = vpop.f32.mrf.mxu2  ;;  %v683_v44 = vpop.f32.mrf.mxu3 }
 0x2d1   :  { %749 = vst [vmem:[%s1498_s6 + $0x180] sm:$0xff] %v576_v39 }
 0x2d2   :  { %750 = vst.msk [vmem:[%s1498_s6 + $0x188] sm:$0xff] %vm145_vm1, %v683_v44 }
 0x2d8   :  { %v579_v28 = vpop.f32.mrf.mxu2  ;;  %v686_v49 = vpop.f32.mrf.mxu3 }
 0x2d9   :  { %751 = vst [vmem:[%s1498_s6 + $0x190] sm:$0xff] %v579_v28 }
 0x2da   :  { %752 = vst.msk [vmem:[%s1498_s6 + $0x198] sm:$0xff] %vm145_vm1, %v686_v49 }
 0x2e0   :  { %v582_v27 = vpop.f32.mrf.mxu2  ;;  %v689_v56 = vpop.f32.mrf.mxu3 }
 0x2e1   :  { %753 = vst [vmem:[%s1498_s6 + $0x1a0] sm:$0xff] %v582_v27 }
 0x2e2   :  { %754 = vst.msk [vmem:[%s1498_s6 + $0x1a8] sm:$0xff] %vm145_vm1, %v689_v56 }
 0x2e8   :  { %v585_v57 = vpop.f32.mrf.mxu2  ;;  %v692_v58 = vpop.f32.mrf.mxu3 }
 0x2e9   :  { %755 = vst [vmem:[%s1498_s6 + $0x1b0] sm:$0xff] %v585_v57 }
 0x2ea   :  { %756 = vst.msk [vmem:[%s1498_s6 + $0x1b8] sm:$0xff] %vm145_vm1, %v692_v58 }
 0x2f0   :  { %v588_v61 = vpop.f32.mrf.mxu2  ;;  %v695_v52 = vpop.f32.mrf.mxu3 }
 0x2f1   :  { %757 = vst [vmem:[%s1498_s6 + $0x1c0] sm:$0xff] %v588_v61 }
 0x2f2   :  { %758 = vst.msk [vmem:[%s1498_s6 + $0x1c8] sm:$0xff] %vm145_vm1, %v695_v52 }
 0x2f8   :  { %v591_v62 = vpop.f32.mrf.mxu2  ;;  %v698_v63 = vpop.f32.mrf.mxu3 }
 0x2f9   :  { %759 = vst [vmem:[%s1498_s6 + $0x1d0] sm:$0xff] %v591_v62 }
 0x2fa   :  { %760 = vst.msk [vmem:[%s1498_s6 + $0x1d8] sm:$0xff] %vm145_vm1, %v698_v63 }

</bundles_post_ra>
